<compile_context>
chip_gen: v7x
topology: tpu7x:2x2x1
jax: 0.10.0
libtpu: 0.0.40
codegen_flags: <defaults>
</compile_context>

<pallas_src>
import functools

import jax
import jax.numpy as jnp
from jax import lax
from jax.experimental import pallas as pl
from jax.experimental.pallas import tpu as pltpu


def _partial_loss_kernel(orig_ref, gen_ref, gram_ref, cons_ref, cons_acc, *,
                         tn, tiles_per_chunk, n_true, needs_mask,
                         min_thresh, max_thresh, gram_dtype, downcast):
    """Per (chunk, tile) step: accumulate gram-difference and constraint losses."""
    t = pl.program_id(1)   # row tile within chunk ("arbitrary" reduction axis)

    @pl.when(t == 0)
    def _init():
        gram_ref[...] = jnp.zeros_like(gram_ref)
        cons_acc[...] = jnp.zeros_like(cons_acc)

    o_in = orig_ref[...]   # [tn, D], input dtype
    g_in = gen_ref[...]

    if needs_mask:  # static: only emitted when N is not a multiple of c*t*tn
        c = pl.program_id(0)
        base = (c * tiles_per_chunk + t) * tn
        rows = base + lax.broadcasted_iota(jnp.int32, (tn, 1), 0)
        valid = rows < n_true
        # Zero padded / out-of-range rows so they contribute nothing to the
        # gram matmuls and so garbage tail contents never propagate.
        o_in = jnp.where(valid, o_in, jnp.zeros_like(o_in))
        g_in = jnp.where(valid, g_in, jnp.zeros_like(g_in))

    # ---- constraint path: per-row L2 norm of (orig - gen) on the VPU --------
    o32 = o_in.astype(jnp.float32)
    g32 = g_in.astype(jnp.float32)
    diff = o32 - g32
    row_norm = jnp.sqrt(jnp.sum(diff * diff, axis=1, keepdims=True))      # [tn, 1]
    row_loss = (jnp.maximum(min_thresh - row_norm, 0.0)
                + jnp.maximum(row_norm - max_thresh, 0.0))                # [tn, 1]
    if needs_mask:
        row_loss = jnp.where(valid, row_loss, 0.0)
    cons_acc[...] += row_loss   # lane-light VMEM accumulate; reduce once per chunk

    # ---- style path: gram-difference accumulation on the MXU ----------------
    # Contract the row (N) axis of both operands: out[i,j] = sum_n x[n,i] x[n,j]
    # (same lowering as pl.dot(trans_a=True); MXU accumulation forced to f32).
    dn = (((0,), (0,)), ((), ()))
    o_mm = o_in.astype(gram_dtype)   # no-op when gram_dtype == input dtype
    g_mm = g_in.astype(gram_dtype)
    if downcast:
        # Well-conditioned low-precision form: o^T o - g^T g = o^T d + d^T g,
        # with d = o - g small, so downcast error scales with |d|, not |o|.
        d_mm = diff.astype(gram_dtype)
        upd = (lax.dot_general(o_mm, d_mm, dn, preferred_element_type=jnp.float32)
               + lax.dot_general(d_mm, g_mm, dn, preferred_element_type=jnp.float32))
    else:
        upd = (lax.dot_general(o_mm, o_mm, dn, preferred_element_type=jnp.float32)
               - lax.dot_general(g_mm, g_mm, dn, preferred_element_type=jnp.float32))
    gram_ref[...] += upd   # single fused accumulator read-modify-write per step

    @pl.when(t == tiles_per_chunk - 1)
    def _finalize():
        cons_ref[...] = jnp.sum(cons_acc[...], axis=(0, 1), keepdims=True)  # (1,1)


def _device_kind():
    try:
        return jax.devices()[0].device_kind.lower()
    except Exception:  # pragma: no cover - defensive
        return ""


def _pick_tiling(n, d, itemsize, tile_rows, num_chunks):
    """Generation- and dtype-aware tile/chunk selection + VMEM limit."""
    is_v7 = "v7" in _device_kind()
    # Physical per-core VMEM: ~64 MiB on v7x, 128 MiB on v5e/v6e; leave headroom.
    vmem_cap = (48 if is_v7 else 100) * 1024 * 1024
    # Sublane packing granularity: 8 rows (4B), 16 (2B), 32 (1B dtypes).
    row_align = max(8, 32 // max(int(itemsize), 1))

    if tile_rows is None:
        out_bytes = 2 * d * d * 4                        # resident gram block (+margin)
        input_budget = max(vmem_cap - out_bytes, 4 * 1024 * 1024)
        bytes_per_row = 2 * 2 * d * itemsize             # 2 operands x 2 pipeline bufs
        tn = input_budget // max(bytes_per_row, 1)
        cap = 1024 if is_v7 else 2048
        tn = max(row_align, min(cap, (tn // row_align) * row_align))
    else:
        tn = max(row_align, (int(tile_rows) // row_align) * row_align)
    n_align = ((n + row_align - 1) // row_align) * row_align
    tn = int(min(tn, n_align))

    tiles_total = pl.cdiv(n, tn)
    if num_chunks is None:
        # One chunk per TensorCore: only v7x has 2 TCs; v5e/v6e grids are a
        # serial loop on one TC, so an extra chunk only costs extra writebacks.
        num_chunks = 2 if (is_v7 and tiles_total >= 2) else 1
    c = max(1, min(int(num_chunks), tiles_total))
    t = pl.cdiv(tiles_total, c)

    needed = (2 * 2 * tn * d * itemsize      # double-buffered input tiles
              + 2 * d * d * 4                # resident gram block + write buffer
              + tn * 128 * 4                 # (tn,1) f32 constraint scratch (lane pad)
              + (2 << 20))                   # misc margin
    vmem_limit = int(min(vmem_cap, max(32 * 1024 * 1024, needed)))
    return tn, c, t, tiles_total, vmem_limit


def _xla_reference_loss(orig, gen, *, beta=0.1, gamma=0.1,
                        min_thresh=0.2, max_thresh=0.5):
    """Plain-XLA forward (reference + small-problem fallback)."""
    n = orig.shape[0]
    gram_o = (orig.T @ orig) / n
    gram_g = (gen.T @ gen) / n
    l_style = jnp.mean((gram_o - gram_g) ** 2)
    diff = jnp.sqrt(jnp.sum((orig - gen) ** 2, axis=1))
    l_constraint = (jnp.mean(jax.nn.relu(min_thresh - diff))
                    + jnp.mean(jax.nn.relu(diff - max_thresh)))
    return beta * l_style + gamma * l_constraint


def controlled_embedding_loss(style_orig, style_gen, *, alpha=1.0, beta=0.1,
                              gamma=0.1, min_thresh=0.2, max_thresh=0.5,
                              tile_rows=None, num_chunks=None,
                              gram_matmul_dtype=None, use_pallas=None):
    """Pallas TPU implementation of ControlledEmbeddingLoss.forward.

    Notes:
      * gram_matmul_dtype optionally runs the gram matmuls at lower precision on
        the MXU (accumulation stays f32) using a well-conditioned formulation.
        On v7x the MXU has no int8 path (bf16/fp8 only) - int8 configs from
        v5e/v6e are NOT drop-in there.
      * use_pallas=None auto-falls back to XLA for tiny problems where kernel
        launch + grid-step overhead dominates.
    """
    del alpha  # content_loss is never called in forward()
    assert style_orig.shape == style_gen.shape and style_orig.ndim == 2
    n, d = style_orig.shape
    in_dtype = jnp.dtype(style_orig.dtype)
    itemsize = in_dtype.itemsize

    if use_pallas is None:
        use_pallas = (n * d * itemsize >= (2 << 20)) and d >= 128
    if not use_pallas:
        return _xla_reference_loss(style_orig, style_gen, beta=beta, gamma=gamma,
                                   min_thresh=min_thresh, max_thresh=max_thresh)

    gram_dtype = (jnp.dtype(gram_matmul_dtype) if gram_matmul_dtype is not None
                  else in_dtype)
    downcast = gram_dtype.itemsize < in_dtype.itemsize

    tn, c, t, tiles_total, vmem_limit = _pick_tiling(
        n, d, itemsize, tile_rows, num_chunks)
    needs_mask = (c * t * tn != n)
    max_tile = tiles_total - 1

    kernel = functools.partial(
        _partial_loss_kernel,
        tn=tn, tiles_per_chunk=t, n_true=n, needs_mask=needs_mask,
        min_thresh=float(min_thresh), max_thresh=float(max_thresh),
        gram_dtype=gram_dtype, downcast=downcast)

    def row_tile_map(ci, ti):
        # Clamp so a trailing empty tile of the last chunk re-reads a valid
        # tile; its contribution is zeroed by the in-kernel row mask.
        return (jnp.minimum(ci * t + ti, max_tile), 0)

    gram_parts, cons_parts = pl.pallas_call(
        kernel,
        grid=(c, t),
        in_specs=[
            pl.BlockSpec((tn, d), row_tile_map),
            pl.BlockSpec((tn, d), row_tile_map),
        ],
        out_specs=(
            # per-chunk gram-difference accumulator, resident across the t axis
            pl.BlockSpec((None, d, d), lambda ci, ti: (ci, 0, 0)),
            # per-chunk constraint partial sum (written once per chunk)
            pl.BlockSpec((None, 1, 1), lambda ci, ti: (ci, 0, 0)),
        ),
        out_shape=(
            jax.ShapeDtypeStruct((c, d, d), jnp.float32),
            jax.ShapeDtypeStruct((c, 1, 1), jnp.float32),
        ),
        scratch_shapes=[pltpu.VMEM((tn, 1), jnp.float32)],
        compiler_params=pltpu.CompilerParams(
            dimension_semantics=("parallel", "arbitrary"),
            vmem_limit_bytes=vmem_limit),
    )(style_orig, style_gen)

    # ---- tiny O(C*D^2) epilogue in plain XLA (hoisted scalar math) -----------
    inv_n = 1.0 / float(n)
    gram_diff = jnp.sum(gram_parts, axis=0) * inv_n        # (o^T o - g^T g) / N
    l_style = jnp.mean(gram_diff * gram_diff)
    l_constraint = jnp.sum(cons_parts) * inv_n
    return beta * l_style + gamma * l_constraint


if __name__ == "__main__":
    key = jax.random.PRNGKey(0)
    k1, k2 = jax.random.split(key)

    # Small embedding batch consistent with the module: 8 samples, 32-dim feats.
    N, D = 8, 32
    style_orig = jax.random.normal(k1, (N, D), dtype=jnp.float32)
    style_gen = style_orig + 0.1 * jax.random.normal(k2, (N, D), dtype=jnp.float32)

    # Force the Pallas path even at this tiny shape so the kernel is exercised.
    loss = jax.block_until_ready(
        controlled_embedding_loss(style_orig, style_gen, use_pallas=True))
    ref = jax.block_until_ready(_xla_reference_loss(style_orig, style_gen))
    assert jnp.allclose(loss, ref, rtol=1e-5, atol=1e-6), (loss, ref)

    # Auto path (XLA fallback for tiny shapes) must agree too.
    loss_auto = jax.block_until_ready(
        controlled_embedding_loss(style_orig, style_gen))
    assert jnp.allclose(loss_auto, ref, rtol=1e-5, atol=1e-6), (loss_auto, ref)

    # Ragged / multi-chunk / tail-masked path (no wrapper padding pass).
    k3, k4 = jax.random.split(k2)
    N2, D2 = 300, 128
    o2 = jax.random.normal(k3, (N2, D2), dtype=jnp.float32)
    g2 = o2 + 0.05 * jax.random.normal(k4, (N2, D2), dtype=jnp.float32)
    loss2 = jax.block_until_ready(
        controlled_embedding_loss(o2, g2, use_pallas=True,
                                  tile_rows=64, num_chunks=2))
    ref2 = jax.block_until_ready(_xla_reference_loss(o2, g2))
    assert jnp.allclose(loss2, ref2, rtol=1e-5, atol=1e-5), (loss2, ref2)

    print("KERNEL_OK")
</pallas_src>

<mosaic_0001>
module attributes {stable_mosaic.version = 11 : i64} {
  func.func @_partial_loss_kernel(%arg0: i32, %arg1: i32, %arg2: memref<8x32xf32, #tpu.memory_space<vmem>>, %arg3: memref<8x32xf32, #tpu.memory_space<vmem>>, %arg4: memref<1x32x32xf32, #tpu.memory_space<vmem>>, %arg5: memref<1x1x1xf32, #tpu.memory_space<vmem>>, %arg6: memref<8x1xf32, #tpu.memory_space<vmem>>) attributes {dimension_semantics = [#tpu.dimension_semantics<parallel>, #tpu.dimension_semantics<arbitrary>], iteration_bounds = array<i64: 1, 1>, scalar_prefetch = 0 : i64, scratch_operands = 1 : i64, tpu.core_type = #tpu.core_type<tc>, window_params = [{transform_indices = @transform_0, window_bounds = array<i64: 8, 32>}, {transform_indices = @transform_1, window_bounds = array<i64: 8, 32>}, {transform_indices = @transform_2, window_bounds = array<i64: 1, 32, 32>}, {transform_indices = @transform_3, window_bounds = array<i64: 1, 1, 1>}]} {
    %c0_i32 = arith.constant 0 : i32
    %0 = arith.cmpi eq, %arg1, %c0_i32 : i32
    %1 = arith.extui %0 : i1 to i32
    %c0_i32_0 = arith.constant 0 : i32
    %2 = arith.cmpi ne, %1, %c0_i32_0 : i32
    scf.if %2 {
      %cst_22 = arith.constant 0.000000e+00 : f32
      %34 = vector.broadcast %cst_22 : f32 to vector<32x32xf32>
      %c0_23 = arith.constant 0 : index
      %c0_24 = arith.constant 0 : index
      %c0_25 = arith.constant 0 : index
      %35 = vector.load %arg4[%c0_23, %c0_24, %c0_25] : memref<1x32x32xf32, #tpu.memory_space<vmem>>, vector<1x32x32xf32>
      %36 = vector.shape_cast %35 : vector<1x32x32xf32> to vector<32x32xf32>
      %37 = vector.shape_cast %34 : vector<32x32xf32> to vector<1x32x32xf32>
      tpu.vector_store %arg4[%c0_23, %c0_24, %c0_25], %37 {strides = array<i32>} : memref<1x32x32xf32, #tpu.memory_space<vmem>>, vector<1x32x32xf32>,
      %cst_26 = arith.constant 0.000000e+00 : f32
      %38 = vector.broadcast %cst_26 : f32 to vector<8x1xf32>
      %c0_27 = arith.constant 0 : index
      %c0_28 = arith.constant 0 : index
      %39 = vector.load %arg6[%c0_27, %c0_28] : memref<8x1xf32, #tpu.memory_space<vmem>>, vector<8x1xf32>
      tpu.vector_store %arg6[%c0_27, %c0_28], %38 {strides = array<i32>} : memref<8x1xf32, #tpu.memory_space<vmem>>, vector<8x1xf32>,
    } else {
    }
    %c0 = arith.constant 0 : index
    %c0_1 = arith.constant 0 : index
    %3 = vector.load %arg2[%c0, %c0_1] : memref<8x32xf32, #tpu.memory_space<vmem>>, vector<8x32xf32>
    %c0_2 = arith.constant 0 : index
    %c0_3 = arith.constant 0 : index
    %4 = vector.load %arg3[%c0_2, %c0_3] : memref<8x32xf32, #tpu.memory_space<vmem>>, vector<8x32xf32>
    %5 = arith.subf %3, %4 : vector<8x32xf32>
    %6 = arith.mulf %5, %5 : vector<8x32xf32>
    %cst = arith.constant dense<0.000000e+00> : vector<8xf32>
    %7 = vector.multi_reduction <add>, %6, %cst [1] : vector<8x32xf32> to vector<8xf32>
    %8 = vector.shape_cast %7 : vector<8xf32> to vector<8x1xf32>
    %9 = math.sqrt %8 : vector<8x1xf32>
    %cst_4 = arith.constant 2.000000e-01 : f32
    %10 = vector.broadcast %cst_4 : f32 to vector<8x1xf32>
    %11 = arith.subf %10, %9 : vector<8x1xf32>
    %cst_5 = arith.constant 0.000000e+00 : f32
    %12 = vector.broadcast %cst_5 : f32 to vector<8x1xf32>
    %13 = arith.maximumf %11, %12 : vector<8x1xf32>
    %cst_6 = arith.constant 5.000000e-01 : f32
    %14 = vector.broadcast %cst_6 : f32 to vector<8x1xf32>
    %15 = arith.subf %9, %14 : vector<8x1xf32>
    %cst_7 = arith.constant 0.000000e+00 : f32
    %16 = vector.broadcast %cst_7 : f32 to vector<8x1xf32>
    %17 = arith.maximumf %15, %16 : vector<8x1xf32>
    %18 = arith.addf %13, %17 : vector<8x1xf32>
    %c0_8 = arith.constant 0 : index
    %c0_9 = arith.constant 0 : index
    %19 = vector.load %arg6[%c0_8, %c0_9] : memref<8x1xf32, #tpu.memory_space<vmem>>, vector<8x1xf32>
    %20 = arith.addf %19, %18 : vector<8x1xf32>
    %c0_10 = arith.constant 0 : index
    %c0_11 = arith.constant 0 : index
    %21 = vector.load %arg6[%c0_10, %c0_11] : memref<8x1xf32, #tpu.memory_space<vmem>>, vector<8x1xf32>
    tpu.vector_store %arg6[%c0_10, %c0_11], %20 {strides = array<i32>} : memref<8x1xf32, #tpu.memory_space<vmem>>, vector<8x1xf32>,
    %cst_12 = arith.constant dense<0.000000e+00> : vector<32x32xf32>
    %22 = tpu.matmul %3, %3, %cst_12 {dimension_numbers = #tpu.dot_dimension_numbers<[0], [0], [1], [1], [0, 1, 1, 1], [], []>} : vector<8x32xf32>, vector<8x32xf32>, vector<32x32xf32> -> vector<32x32xf32>
    %cst_13 = arith.constant dense<0.000000e+00> : vector<32x32xf32>
    %23 = tpu.matmul %4, %4, %cst_13 {dimension_numbers = #tpu.dot_dimension_numbers<[0], [0], [1], [1], [0, 1, 1, 1], [], []>} : vector<8x32xf32>, vector<8x32xf32>, vector<32x32xf32> -> vector<32x32xf32>
    %24 = arith.subf %22, %23 : vector<32x32xf32>
    %c0_14 = arith.constant 0 : index
    %c0_15 = arith.constant 0 : index
    %c0_16 = arith.constant 0 : index
    %25 = vector.load %arg4[%c0_14, %c0_15, %c0_16] : memref<1x32x32xf32, #tpu.memory_space<vmem>>, vector<1x32x32xf32>
    %26 = vector.shape_cast %25 : vector<1x32x32xf32> to vector<32x32xf32>
    %27 = arith.addf %26, %24 : vector<32x32xf32>
    %c0_17 = arith.constant 0 : index
    %c0_18 = arith.constant 0 : index
    %c0_19 = arith.constant 0 : index
    %28 = vector.load %arg4[%c0_17, %c0_18, %c0_19] : memref<1x32x32xf32, #tpu.memory_space<vmem>>, vector<1x32x32xf32>
    %29 = vector.shape_cast %28 : vector<1x32x32xf32> to vector<32x32xf32>
    %30 = vector.shape_cast %27 : vector<32x32xf32> to vector<1x32x32xf32>
    tpu.vector_store %arg4[%c0_17, %c0_18, %c0_19], %30 {strides = array<i32>} : memref<1x32x32xf32, #tpu.memory_space<vmem>>, vector<1x32x32xf32>,
    %c0_i32_20 = arith.constant 0 : i32
    %31 = arith.cmpi eq, %arg1, %c0_i32_20 : i32
    %32 = arith.extui %31 : i1 to i32
    %c0_i32_21 = arith.constant 0 : i32
    %33 = arith.cmpi ne, %32, %c0_i32_21 : i32
    scf.if %33 {
      %c0_22 = arith.constant 0 : index
      %c0_23 = arith.constant 0 : index
      %34 = vector.load %arg6[%c0_22, %c0_23] : memref<8x1xf32, #tpu.memory_space<vmem>>, vector<8x1xf32>
      %35 = vector.shape_cast %34 : vector<8x1xf32> to vector<1x8x1xf32>
      %cst_24 = arith.constant dense<0.000000e+00> : vector<1xf32>
      %36 = vector.multi_reduction <add>, %35, %cst_24 [1, 2] : vector<1x8x1xf32> to vector<1xf32>
      %37 = vector.shape_cast %36 : vector<1xf32> to vector<1x1x1xf32>
      %38 = vector.extract %37[0, 0, 0] : f32 from vector<1x1x1xf32>
      %39 = vector.broadcast %38 : f32 to vector<1x1xf32>
      %c0_25 = arith.constant 0 : index
      %c0_26 = arith.constant 0 : index
      %c0_27 = arith.constant 0 : index
      %40 = vector.load %arg5[%c0_25, %c0_26, %c0_27] : memref<1x1x1xf32, #tpu.memory_space<vmem>>, vector<1x1x1xf32>
      %41 = vector.shape_cast %40 : vector<1x1x1xf32> to vector<1x1xf32>
      %42 = vector.shape_cast %39 : vector<1x1xf32> to vector<1x1x1xf32>
      tpu.vector_store %arg5[%c0_25, %c0_26, %c0_27], %42 {strides = array<i32>} : memref<1x1x1xf32, #tpu.memory_space<vmem>>, vector<1x1x1xf32>,
    } else {
    }
    return
  }
  func.func @transform_0(%arg0: i32, %arg1: i32) -> (i32, i32) {
    %c1_i32 = arith.constant 1 : i32
    %0 = arith.muli %arg0, %c1_i32 : i32
    %1 = arith.addi %0, %arg1 : i32
    %c0_i32 = arith.constant 0 : i32
    %2 = arith.minsi %1, %c0_i32 : i32
    %c0_i32_0 = arith.constant 0 : i32
    %c0_i32_1 = arith.constant 0 : i32
    return %2, %c0_i32_0 : i32, i32
  }
  func.func @transform_1(%arg0: i32, %arg1: i32) -> (i32, i32) {
    %c1_i32 = arith.constant 1 : i32
    %0 = arith.muli %arg0, %c1_i32 : i32
    %1 = arith.addi %0, %arg1 : i32
    %c0_i32 = arith.constant 0 : i32
    %2 = arith.minsi %1, %c0_i32 : i32
    %c0_i32_0 = arith.constant 0 : i32
    %c0_i32_1 = arith.constant 0 : i32
    return %2, %c0_i32_0 : i32, i32
  }
  func.func @transform_2(%arg0: i32, %arg1: i32) -> (i32, i32, i32) {
    %c0_i32 = arith.constant 0 : i32
    %c0_i32_0 = arith.constant 0 : i32
    %c0_i32_1 = arith.constant 0 : i32
    return %arg0, %c0_i32, %c0_i32_0 : i32, i32, i32
  }
  func.func @transform_3(%arg0: i32, %arg1: i32) -> (i32, i32, i32) {
    %c0_i32 = arith.constant 0 : i32
    %c0_i32_0 = arith.constant 0 : i32
    %c0_i32_1 = arith.constant 0 : i32
    return %arg0, %c0_i32, %c0_i32_0 : i32, i32, i32
  }
}

</mosaic_0001>

<bundles_post_ra>
// kernel: tpu_custom_call.1
= control target key start
LH: loop header
LB: loop body
LE: loop exit
PB: predicated region body
PF: predicated region fallthrough
CT: control target
= control target key end

     0   :  { %9 = vsyncpa [#allocation4], 0  ;;  %s655_s0 = inlined_call_operand.hbm [shape: f32[8,32], index: 0, kind: input, shape index: {}]   ;;  %s656_s1 = inlined_call_operand.hbm [shape: f32[8,32], index: 1, kind: input, shape index: {}]   ;;  %s657_s2 = inlined_call_operand.hbm [shape: f32[1,32,32], index: 2, kind: output, shape index: {0}]   ;;  %s658_s3 = inlined_call_operand.hbm [shape: f32[1,1,1], index: 3, kind: output, shape index: {1}]  }
   0x1   :  { %10 = vsyncpa [#allocation7], 0 }
   0x2   :  { %11 = vsyncpa [#allocation5], 0 }
   0x3   :  { %12 = vsyncpa [#allocation10], 0  ;;  %s560_s12 = smov [#allocation3]   ;;  %s561_s14 = smov [#allocation6]  }
   0x4   :  { %s24_s13 = sshll.u32 %s560_s12, 4  ;;  %s39_s15 = sshll.u32 %s561_s14, 4  ;;  %s25_s13 = int_to_ptr.vmem [resolvable:$true] %s24_s13  ;;  %s40_s15 = int_to_ptr.vmem [resolvable:$true] %s39_s15 }
   0x5   :  { %s464_s18 = scalar_lea.hbm %s655_s0, 128 }
   0x6   :  { %p465_p0 = scmp.ne.s32.totalorder %s655_s0, %s464_s18  ;;  %p468_p1 = scmp.lt.u32.totalorder %s464_s18, %s655_s0 }
   0x8   :  { %p470_p2 = pnand %p468_p1, %p465_p0 }
   0xa   :  { %473 = shalt.err (!%p470_p2)
}
   0xb   :  { %s474_s23 = scalar_lea.vmem %s25_s13, 128  ;;  %p479_p4 = scmp.lt.s32.totalorder %s25_s13, %s25_s13 }
   0xc   :  { %p475_p3 = scmp.ne.s32.totalorder %s25_s13, %s474_s23  ;;  %p480_p5 = scmp.lt.s32.totalorder %s474_s23, %s474_s23 }
   0xe   :  { %p481_p6 = por %p480_p5, %p479_p4 }
  0x10   :  { %p482_p7 = pnand %p481_p6, %p475_p3 }
  0x12   :  { %485 = shalt.err (!%p482_p7)
}
  0x13   :  { %27 = dma.hbm_to_vmem [thread:$0]  %s655_s0, 128, %s25_s13, [#allocation4]  }
  0x14   :  { %s486_s28 = scalar_lea.hbm %s656_s1, 128 }
  0x15   :  { %p487_p8 = scmp.ne.s32.totalorder %s656_s1, %s486_s28  ;;  %p490_p9 = scmp.lt.u32.totalorder %s486_s28, %s656_s1 }
  0x17   :  { %p492_p10 = pnand %p490_p9, %p487_p8 }
  0x19   :  { %495 = shalt.err (!%p492_p10)
}
  0x1a   :  { %s496_s6 = scalar_lea.vmem %s40_s15, 128  ;;  %p501_p12 = scmp.lt.s32.totalorder %s40_s15, %s40_s15 }
  0x1b   :  { %p497_p11 = scmp.ne.s32.totalorder %s40_s15, %s496_s6  ;;  %p502_p13 = scmp.lt.s32.totalorder %s496_s6, %s496_s6 }
  0x1d   :  { %p503_p0 = por %p502_p13, %p501_p12 }
  0x1f   :  { %p504_p1 = pnand %p503_p0, %p497_p11 }
  0x21   :  { %507 = shalt.err (!%p504_p1)
}
  0x22   :  { %42 = dma.hbm_to_vmem [thread:$0]  %s656_s1, 128, %s40_s15, [#allocation7]  }
  0x23   :  { %552 = dma.done.wait [#allocation4], 128  }
  0x24   :  { %553 = vsyncadd [#allocation4], 4294967168 }
  0x25   :  { %554 = dma.done.wait [#allocation7], 128  }
  0x26   :  { %555 = vsyncadd [#allocation7], 4294967168  ;;  %v66_v0 = vld [vmem:[#allocation3] sm:$0xff]  ;;  %v67_v1 = vld [vmem:[#allocation6] sm:$0xff]  ;;  %vm59_vm0 = vcmask 261120   ;;  %vm64_vm1 = vcmask 7168  }
  0x27   :  { %90 = vxpose.xlu0.b32.start.end [1/1] (short) (narrow) %v66_v0, 32  ;;  %v68_v2 = vsub.f32 %v66_v0, %v67_v1  ;;  %437 = vmatprep.subr.mxu0 %v66_v0  ;;  %v562_v5 = vmov 0.0   ;;  %vm122_vm2 = vcmask 64512   ;;  %s563_s1 = smov [#allocation8]  }
  0x28   :  { %438 = vmatpush3.msra.mxu0 %v66_v0  ;;  %445 = vmatprep.subr.mxu1 %v67_v1  ;;  %65 = vst.msk [vmem:[#allocation2] sm:$0xff] %vm64_vm1, %v562_v5  ;;  %s387_s8 = sshll.u32 %s563_s1, 4  ;;  %s388_s8 = int_to_ptr.vmem [resolvable:$true] %s387_s8 }
  0x29   :  { %v69_v3 = vmul.f32 %v68_v2, %v68_v2  ;;  %446 = vmatpush3.msra.mxu1 %v67_v1  ;;  %60 = vst.msk [vmem:[#allocation8] sm:$0xff] %vm59_vm0, %v562_v5  ;;  %61 = vst.msk [vmem:[#allocation8 + $0x8] sm:$0xff] %vm59_vm0, %v562_v5  ;;  %s508_s9 = scalar_lea.vmem %s388_s8, 512  ;;  %p513_p3 = scmp.lt.s32.totalorder %s388_s8, %s388_s8 }
  0x2a   :  { %62 = vst.msk [vmem:[#allocation8 + $0x10] sm:$0xff] %vm59_vm0, %v562_v5  ;;  %63 = vst.msk [vmem:[#allocation8 + $0x18] sm:$0xff] %vm59_vm0, %v562_v5  ;;  %p509_p2 = scmp.ne.s32.totalorder %s388_s8, %s508_s9  ;;  %p514_p4 = scmp.lt.s32.totalorder %s508_s9, %s508_s9 }
  0x2b   :  { %v71_v4 = vsel %vm59_vm0, %v69_v3, 0.0 }
  0x2c   :  { %72 = vadd.xlane.f32.xlu1 %v71_v4  ;;  %p515_p5 = por %p514_p4, %p513_p3 }
  0x2e   :  { %p516_p6 = pnand %p515_p5, %p509_p2 }
  0x2f   :  { %v86_v24 = vld [vmem:[#allocation2] sm:$0xff] }
  0x30   :  { %v354_v41 = vld [vmem:[#allocation8 + $0x8] sm:$0xff]  ;;  %v353_v44 = vld [vmem:[#allocation8] sm:$0xff] }
  0x31   :  { %v356_v49 = vld [vmem:[#allocation8 + $0x18] sm:$0xff]  ;;  %v355_v52 = vld [vmem:[#allocation8 + $0x10] sm:$0xff] }
  0x34   :  { %220 = vxpose.xlu0.b32.start.end [1/1] (short) (narrow) %v67_v1, 32 }
  0xa7   :  { %v106_v6 = vpop.trf.xlu0 }
  0xa8   :  { %439 = vmatprep.mubr.msk.f32.mxu0 %vm122_vm2, %v106_v6 }
  0xab   :  { %v107_v7 = vpop.trf.xlu0 }
  0xac   :  { %440 = vmatmul.mubr.msk.f32.vlgmr.msra.gmra.mrb[0].mxu0 %vm122_vm2, %v107_v7 }
  0xaf   :  { %v108_v8 = vpop.trf.xlu0 }
  0xb0   :  { %442 = vmatprep.mubr.msk.f32.mxu0 %vm122_vm2, %v108_v8 }
  0xb3   :  { %v109_v9 = vpop.trf.xlu0 }
  0xb4   :  { %443 = vmatmul.mubr.msk.f32.gmra.mrb[2].mxu0 %vm122_vm2, %v109_v9 }
  0xb7   :  { %v236_v10 = vpop.trf.xlu0 }
  0xb8   :  { %447 = vmatprep.mubr.msk.f32.mxu1 %vm122_vm2, %v236_v10 }
  0xb9   :  { %v73_v11 = vpop.xlane.xlu1 %72 }
  0xba   :  { %462 = vrsqrt.f32 %v73_v11  ;;  %vm76_vm3 = vcmp.eq.f32.partialorder %v73_v11, inf  ;;  %v79_v17 = vand.u32 2147483648, %v73_v11  ;;  %vm78_vm4 = vcmp.eq.f32.partialorder %v73_v11, 0.0 }
  0xbb   :  { %v237_v12 = vpop.trf.xlu0 }
  0xbc   :  { %448 = vmatmul.mubr.msk.f32.vlgmr.msra.gmra.mrb[0].mxu1 %vm122_vm2, %v237_v12 }
  0xbf   :  { %v238_v13 = vpop.trf.xlu0 }
  0xc0   :  { %450 = vmatprep.mubr.msk.f32.mxu1 %vm122_vm2, %v238_v13 }
  0xc3   :  { %v239_v14 = vpop.trf.xlu0 }
  0xc4   :  { %v463_v15 = vpop.eup %462  ;;  %451 = vmatmul.mubr.msk.f32.gmra.mrb[2].mxu1 %vm122_vm2, %v239_v14 }
  0xc5   :  { %v75_v16 = vmul.f32 %v463_v15, %v73_v11 }
  0xc7   :  { %v77_v18 = vsel %vm76_vm3, %v73_v11, %v75_v16 }
  0xc8   :  { %v80_v19 = vsel %vm78_vm4, %v79_v17, %v77_v18 }
  0xc9   :  { %v81_v20 = vsub.f32 0.2, %v80_v19  ;;  %v418_v21 = vadd.f32 -0.5, %v80_v19 }
  0xcb   :  { %v82_v22 = vmax.f32 %v81_v20, 0.0  ;;  %v84_v23 = vmax.f32 %v418_v21, 0.0 }
  0xcd   :  { %v85_v25 = vadd.f32 %v84_v23, %v82_v22 }
  0xcf   :  { %v87_v26 = vadd.f32 %v86_v24, %v85_v25 }
  0xd1   :  { %89 = vst.msk [vmem:[#allocation2] sm:$0xff] %vm64_vm1, %v87_v26 }
  0xd8   :  { %v368_v27 = vld [vmem:[#allocation2] sm:$0xff] }
  0xd9   :  { %v369_v28 = vsel %vm64_vm1, %v368_v27, 0.0 }
  0xda   :  { %370 = vadd.xlane.f32.xlu1 %v369_v28 }
 0x167   :  { %v371_v29 = vpop.xlane.xlu1 %370 }
 0x168   :  { %v372_v30 = vrot.slane %v371_v29, 4 }
 0x16a   :  { %v373_v31 = vadd.f32 %v372_v30, %v371_v29 }
 0x16c   :  { %v374_v32 = vrot.slane %v373_v31, 2 }
 0x16e   :  { %v375_v33 = vadd.f32 %v374_v32, %v373_v31 }
 0x170   :  { %v376_v34 = vrot.slane %v375_v33, 1 }
 0x172   :  { %v377_v35 = vadd.f32 %v376_v34, %v375_v33 }
 0x174   :  { %453 = vpush %v377_v35 }
 0x17f   :  { %v441_v36 = vpop.f32.mrb[0].mxu0 }
 0x180   :  { %v201_v37 = vpop.f32.mrb[1].mxu0 }
 0x187   :  { %v444_v38 = vpop.f32.mrb[2].mxu0 }
 0x188   :  { %v211_v39 = vpop.f32.mrb[3].mxu0 }
 0x18f   :  { %v449_v40 = vpop.f32.mrb[0].mxu1 }
 0x190   :  { %v350_v42 = vsub.f32 %v441_v36, %v449_v40  ;;  %v330_v43 = vpop.f32.mrb[1].mxu1 }
 0x191   :  { %v349_v45 = vsub.f32 %v201_v37, %v330_v43 }
 0x192   :  { %v358_v46 = vadd.f32 %v354_v41, %v350_v42 }
 0x193   :  { %v357_v47 = vadd.f32 %v353_v44, %v349_v45 }
 0x194   :  { %362 = vst.msk [vmem:[#allocation8 + $0x8] sm:$0xff] %vm59_vm0, %v358_v46 }
 0x195   :  { %361 = vst.msk [vmem:[#allocation8] sm:$0xff] %vm59_vm0, %v357_v47 }
 0x197   :  { %v452_v48 = vpop.f32.mrb[2].mxu1 }
 0x198   :  { %v352_v50 = vsub.f32 %v444_v38, %v452_v48  ;;  %v340_v51 = vpop.f32.mrb[3].mxu1 }
 0x199   :  { %v351_v53 = vsub.f32 %v211_v39, %v340_v51 }
 0x19a   :  { %v360_v54 = vadd.f32 %v356_v49, %v352_v50 }
 0x19b   :  { %v359_v55 = vadd.f32 %v355_v52, %v351_v53 }
 0x19c   :  { %364 = vst.msk [vmem:[#allocation8 + $0x18] sm:$0xff] %vm59_vm0, %v360_v54 }
 0x19d   :  { %363 = vst.msk [vmem:[#allocation8 + $0x10] sm:$0xff] %vm59_vm0, %v359_v55 }
 0x19e   :  { %519 = shalt.err (!%p516_p6)
}
 0x19f   :  { %s520_s12 = scalar_lea.hbm %s657_s2, 512 }
 0x1a0   :  { %p521_p7 = scmp.ne.s32.totalorder %s657_s2, %s520_s12  ;;  %p524_p8 = scmp.lt.u32.totalorder %s520_s12, %s657_s2 }
 0x1a2   :  { %p526_p9 = pnand %p524_p8, %p521_p7 }
 0x1a4   :  { %529 = shalt.err (!%p526_p9)
}
 0x1a5   :  { %s564_s17 = smov 128   ;;  %s565_s18 = smov 8   ;;  %vm380_vm5 = vcmask 0  }
 0x1a6   :  { %393 = dma.vmem_to_hbm [thread:$0]  %s388_s8, 512, %s657_s2, [#allocation5], %s564_s17, %s564_s17, %s565_s18  }
 0x1a7   :  { %s566_s21 = smov [#allocation9]   ;;  %s454_s23 = spop %453 }
 0x1a8   :  { %s400_s22 = sshll.u32 %s566_s21, 4  ;;  %v379_v56 = vstv %s454_s23  ;;  %s401_s22 = int_to_ptr.vmem [resolvable:$true] %s400_s22 }
 0x1a9   :  { %381 = vst.msk [vmem:[#allocation9] sm:$0x1] %vm380_vm5, %v379_v56  ;;  %s530_s24 = scalar_lea.vmem %s401_s22, 16  ;;  %s534_s25 = scalar_lea.vmem %s401_s22, 32 }
 0x1aa   :  { %p531_p10 = scmp.ne.s32.totalorder %s401_s22, %s530_s24  ;;  %p535_p11 = scmp.lt.s32.totalorder %s401_s22, %s401_s22 }
 0x1ab   :  { %p536_p12 = scmp.lt.s32.totalorder %s534_s25, %s530_s24 }
 0x1ad   :  { %p537_p13 = por %p536_p12, %p535_p11 }
 0x1af   :  { %p538_p0 = pnand %p537_p13, %p531_p10 }
 0x1b1   :  { %541 = shalt.err (!%p538_p0)
}
 0x1b2   :  { %s542_s28 = scalar_lea.hbm %s658_s3, 16 }
 0x1b3   :  { %p543_p1 = scmp.ne.s32.totalorder %s658_s3, %s542_s28  ;;  %p546_p2 = scmp.lt.u32.totalorder %s542_s28, %s658_s3 }
 0x1b5   :  { %p548_p3 = pnand %p546_p2, %p543_p1 }
 0x1b7   :  { %551 = shalt.err (!%p548_p3)
}
 0x1b8   :  { %403 = dma.vmem_to_hbm [thread:$0]  %s401_s22, 16, %s658_s3, [#allocation10]  }
 0x1b9   :  { %556 = dma.done.wait [#allocation5], 512  }
 0x1ba   :  { %557 = vsyncadd [#allocation5], 4294966784 }
 0x1bb   :  { %558 = dma.done.wait [#allocation10], 16  }
 0x1bc   :  { %559 = vsyncadd [#allocation10], 4294967280 }
 0x1bd   :  { %410 = vsyncpa [#allocation4], 1 }
 0x1be   :  { %411 = vsyncpa [#allocation7], 1 }
 0x1bf   :  { %412 = vsyncpa [#allocation5], 1 }
 0x1c0   :  { %413 = vsyncpa [#allocation10], 1 }

</bundles_post_ra>
